<compile_context>
chip_gen: v5e
topology: v5e:2x2
jax: 0.10.0
libtpu: 0.0.40
codegen_flags: <defaults>
</compile_context>

<pallas_src>
import math
from functools import partial

import jax
import jax.numpy as jnp
from jax.experimental import pallas as pl
from jax.experimental.pallas import tpu as pltpu


# ---------------------------------------------------------------------------
# Generation-aware defaults (tile sizes + VMEM limit)
# ---------------------------------------------------------------------------
def _generation_defaults():
    """Return (block_q, block_kv, vmem_limit_bytes) based on the chip's VMEM."""
    try:
        vmem_bytes = int(pltpu.get_tpu_info().vmem_capacity_bytes)
    except Exception:
        vmem_bytes = 64 * 1024 * 1024  # assume smallest (v7x-class) VMEM
    if vmem_bytes >= 100 * 1024 * 1024:
        # v5e / v6e: 128 MiB physical VMEM -> bigger tiles amortize the
        # per-grid-step overhead and feed the MXU longer runs.
        return 512, 512, 96 * 1024 * 1024
    # v7x-class (64 MiB physical VMEM) or unknown: conservative tiles/limit so
    # double-buffered activation tiles + scratch never spill.
    return 256, 256, 44 * 1024 * 1024


# ---------------------------------------------------------------------------
# Kernel 1: fused QKV projection (runs once per token)
# ---------------------------------------------------------------------------
def _qkv_proj_kernel(x_ref, w_ref, b_ref, q_ref, k_ref, v_ref):
    d = q_ref.shape[-1]
    x = x_ref[...].astype(w_ref.dtype)
    qkv = jnp.dot(x, w_ref[...], preferred_element_type=jnp.float32) + b_ref[...]
    # For D % 128 == 0 (production shapes) this split is lane-aligned and free;
    # for smaller D it costs a one-time relayout here, never in the attention loop.
    q_ref[...] = qkv[:, :d].astype(q_ref.dtype)
    k_ref[...] = qkv[:, d:2 * d].astype(k_ref.dtype)
    v_ref[...] = qkv[:, 2 * d:].astype(v_ref.dtype)


def _qkv_projection(x, w_qkv, b_qkv, *, block, matmul_dtype, vmem_limit_bytes):
    B, S, D = x.shape
    grid = (B, S // block)

    # Constant-index weights: single-buffer them once they are big enough to
    # matter (a never-changing block gains nothing from double buffering).
    single_buffer = D >= 256

    def const_spec(arr):
        idx_map = lambda b, i: (0,) * arr.ndim
        if single_buffer:
            return pl.BlockSpec(arr.shape, idx_map, pipeline_mode=pl.Buffered(1))
        return pl.BlockSpec(arr.shape, idx_map)

    def tok_spec():
        return pl.BlockSpec((pl.Squeezed(), block, D), lambda b, i: (b, i, 0))

    mm_item = jnp.dtype(matmul_dtype).itemsize
    cost = pl.CostEstimate(
        flops=2 * B * S * D * (3 * D),
        transcendentals=0,
        bytes_accessed=(x.size * x.dtype.itemsize
                        + w_qkv.size * w_qkv.dtype.itemsize
                        + b_qkv.size * b_qkv.dtype.itemsize
                        + 3 * B * S * D * mm_item))

    out_sds = jax.ShapeDtypeStruct((B, S, D), matmul_dtype)
    return pl.pallas_call(
        _qkv_proj_kernel,
        out_shape=(out_sds, out_sds, out_sds),
        grid_spec=pltpu.PrefetchScalarGridSpec(
            num_scalar_prefetch=0,
            grid=grid,
            in_specs=[tok_spec(), const_spec(w_qkv), const_spec(b_qkv)],
            out_specs=(tok_spec(), tok_spec(), tok_spec()),
        ),
        compiler_params=pltpu.CompilerParams(
            dimension_semantics=("parallel", "parallel"),
            vmem_limit_bytes=vmem_limit_bytes,
        ),
        cost_estimate=cost,
    )(x, w_qkv, b_qkv)


# ---------------------------------------------------------------------------
# Kernel 2: flash attention + residual + affine-free layer_norm
# ---------------------------------------------------------------------------
def _flash_attn_kernel(xq_ref, q_ref, k_ref, v_ref, o_ref,
                       m_scr, l_scr, acc_scr, *, eps):
    ki = pl.program_id(2)

    @pl.when(ki == 0)
    def _init():
        m_scr[...] = jnp.full_like(m_scr, -jnp.inf)
        l_scr[...] = jnp.zeros_like(l_scr)
        acc_scr[...] = jnp.zeros_like(acc_scr)

    # scores = Q @ K^T without materializing a transposed copy of K.
    s = jax.lax.dot_general(
        q_ref[...], k_ref[...],
        dimension_numbers=(((1,), (1,)), ((), ())),
        preferred_element_type=jnp.float32)                     # (TQ, TK) f32

    # Online (flash) softmax update; all running statistics stay f32.
    m_prev = m_scr[...]
    m_new = jnp.maximum(m_prev, jnp.max(s, axis=-1, keepdims=True))
    alpha = jnp.exp(m_prev - m_new)
    p = jnp.exp(s - m_new)
    l_scr[...] = alpha * l_scr[...] + jnp.sum(p, axis=-1, keepdims=True)
    acc_scr[...] = alpha * acc_scr[...] + jnp.dot(
        p.astype(v_ref.dtype), v_ref[...], preferred_element_type=jnp.float32)
    m_scr[...] = m_new

    @pl.when(ki == pl.num_programs(2) - 1)
    def _finalize():
        # Fold the softmax denominator once per q-tile, add the residual, then
        # affine-free layer_norm, all in f32.  pl.reciprocal(approx=False) is
        # exact, so the tight f32 test tolerance is preserved.
        inv_l = pl.reciprocal(l_scr[...], approx=False)
        y = acc_scr[...] * inv_l + xq_ref[...].astype(jnp.float32)
        mean = jnp.mean(y, axis=-1, keepdims=True)
        cent = y - mean
        var = jnp.mean(cent * cent, axis=-1, keepdims=True)
        o_ref[...] = (cent * jax.lax.rsqrt(var + eps)).astype(o_ref.dtype)


def _flash_attention(x, q, k, v, *, eps, block_q, block_kv, vmem_limit_bytes):
    B, S, D = x.shape
    grid = (B, S // block_q, S // block_kv)
    qkv_item = jnp.dtype(q.dtype).itemsize
    n_q_tiles = S // block_q

    def q_spec():
        return pl.BlockSpec((pl.Squeezed(), block_q, D), lambda b, qi, ki: (b, qi, 0))

    def kv_spec():
        return pl.BlockSpec((pl.Squeezed(), block_kv, D), lambda b, qi, ki: (b, ki, 0))

    cost = pl.CostEstimate(
        flops=4 * B * S * S * D,                         # scores + PV matmuls
        transcendentals=B * S * S,                       # one exp per score
        bytes_accessed=(B * S * D * x.dtype.itemsize     # x residual (once per q-tile)
                        + B * S * D * qkv_item           # Q (once)
                        + 2 * n_q_tiles * B * S * D * qkv_item  # K, V re-streamed per q-tile
                        + B * S * D * x.dtype.itemsize)) # output

    kernel = partial(_flash_attn_kernel, eps=eps)
    return pl.pallas_call(
        kernel,
        out_shape=jax.ShapeDtypeStruct((B, S, D), x.dtype),
        grid_spec=pltpu.PrefetchScalarGridSpec(
            num_scalar_prefetch=0,
            grid=grid,
            in_specs=[q_spec(),   # x (residual for this q-tile)
                      q_spec(),   # projected Q tile
                      kv_spec(),  # projected K tile
                      kv_spec()], # projected V tile
            out_specs=q_spec(),
            scratch_shapes=[
                pltpu.VMEM((block_q, 1), jnp.float32),   # running max m
                pltpu.VMEM((block_q, 1), jnp.float32),   # running sum l
                pltpu.VMEM((block_q, D), jnp.float32),   # output accumulator
            ],
        ),
        compiler_params=pltpu.CompilerParams(
            # Safe to megacore-split batch AND q-tile axes: K/V are precomputed,
            # so there is no pl.when(qi == 0) scratch-cache hazard on v7x.
            dimension_semantics=("parallel", "parallel", "arbitrary"),
            vmem_limit_bytes=vmem_limit_bytes,
        ),
        cost_estimate=cost,
    )(x, q, k, v)


# ---------------------------------------------------------------------------
# Public wrapper
# ---------------------------------------------------------------------------
def multi_head_attention(x, params, *, num_heads, eps=1e-5,
                         block_q=None, block_kv=None,
                         matmul_dtype=jnp.bfloat16,
                         vmem_limit_bytes=None):
    """x: (B, S, D). params: PyTorch-layout weights wq,bq,wk,bk,wv,bv.

    matmul_dtype controls only the MXU input dtype (bf16 by default on every
    TPU generation); accumulation, softmax and layer_norm always run in f32.
    """
    # TODO(synk): mode='cross' (separate K/V source) and the unused w_o from
    # __init__ are not wired up; the forward as written is self-attention only.
    B, S, D = x.shape
    assert D % num_heads == 0, "Dimension must be divisible by number of heads"
    inv_sqrt_dk = 1.0 / math.sqrt(D // num_heads)

    def_q, def_kv, def_vmem = _generation_defaults()
    block_q = min(block_q or def_q, S)
    block_kv = min(block_kv or def_kv, S)
    vmem_limit_bytes = vmem_limit_bytes or def_vmem
    assert S % block_q == 0 and S % block_kv == 0, "S must divide the chosen tiles"

    # Fused QKV weight (PyTorch stores W as (out, in) -> transpose); the
    # 1/sqrt(d_k) score scale is folded into the Q columns (zero kernel cost).
    w_qkv = jnp.concatenate(
        [params["wq"].T * inv_sqrt_dk, params["wk"].T, params["wv"].T],
        axis=1).astype(matmul_dtype)                                  # (D, 3D)
    b_qkv = jnp.concatenate(
        [params["bq"] * inv_sqrt_dk, params["bk"], params["bv"]]
    ).reshape(1, 3 * D).astype(jnp.float32)                           # (1, 3D)

    q, k, v = _qkv_projection(x, w_qkv, b_qkv, block=block_q,
                              matmul_dtype=matmul_dtype,
                              vmem_limit_bytes=vmem_limit_bytes)
    return _flash_attention(x, q, k, v, eps=eps, block_q=block_q,
                            block_kv=block_kv,
                            vmem_limit_bytes=vmem_limit_bytes)


# ---------------------------------------------------------------------------
# Reference + test
# ---------------------------------------------------------------------------
def _reference(x, params, *, num_heads, eps=1e-5):
    """Pure-JAX replica of the PyTorch forward (mode='scaled'/'self')."""
    D = x.shape[-1]
    sqrt_dk = math.sqrt(D // num_heads)
    q = x @ params["wq"].T + params["bq"]
    k = x @ params["wk"].T + params["bk"]
    v = x @ params["wv"].T + params["bv"]
    s = (q @ jnp.swapaxes(k, -2, -1)) / sqrt_dk
    p = jax.nn.softmax(s, axis=-1)
    y = p @ v + x
    mean = jnp.mean(y, axis=-1, keepdims=True)
    var = jnp.mean((y - mean) ** 2, axis=-1, keepdims=True)
    return (y - mean) / jnp.sqrt(var + eps)


def init_params(key, dim):
    """Deterministic synthetic init mimicking nn.Linear: W (out,in), b (out,)."""
    ks = jax.random.split(key, 8)
    bound = 1.0 / math.sqrt(dim)

    def u(k, shape):
        return jax.random.uniform(k, shape, jnp.float32, -bound, bound)

    return {
        "wq": u(ks[0], (dim, dim)), "bq": u(ks[1], (dim,)),
        "wk": u(ks[2], (dim, dim)), "bk": u(ks[3], (dim,)),
        "wv": u(ks[4], (dim, dim)), "bv": u(ks[5], (dim,)),
        # w_o exists in __init__ but is unused in forward; omitted on purpose.
    }


if __name__ == "__main__":
    B, S, D, H = 2, 8, 32, 4
    key = jax.random.PRNGKey(0)
    kx, kp = jax.random.split(key)
    x = jax.random.normal(kx, (B, S, D), jnp.float32)
    params = init_params(kp, D)

    ref = _reference(x, params, num_heads=H)

    # Default path: bf16 MXU inputs on every generation, f32 accumulation /
    # softmax / layer_norm.  Tolerance reflects bf16 rounding of matmul inputs.
    out = multi_head_attention(x, params, num_heads=H)
    out = jax.block_until_ready(out)
    assert out.shape == (B, S, D)
    assert jnp.allclose(out, ref, atol=5e-2, rtol=5e-2), "bf16 mismatch vs reference"

    # f32 MXU-input path: tight check against the pure-JAX reference.
    out_f32 = multi_head_attention(x, params, num_heads=H,
                                   matmul_dtype=jnp.float32)
    out_f32 = jax.block_until_ready(out_f32)
    assert jnp.allclose(out_f32, ref, atol=2e-4, rtol=2e-4), "f32 mismatch vs reference"

    print("KERNEL_OK")
</pallas_src>

<mosaic_0001>
module attributes {stable_mosaic.version = 11 : i64} {
  func.func @_qkv_proj_kernel(%arg0: i32, %arg1: i32, %arg2: memref<1x8x32xf32, #tpu.memory_space<vmem>>, %arg3: memref<32x96xbf16, #tpu.memory_space<vmem>>, %arg4: memref<1x96xf32, #tpu.memory_space<vmem>>, %arg5: memref<1x8x32xbf16, #tpu.memory_space<vmem>>, %arg6: memref<1x8x32xbf16, #tpu.memory_space<vmem>>, %arg7: memref<1x8x32xbf16, #tpu.memory_space<vmem>>) attributes {dimension_semantics = [#tpu.dimension_semantics<parallel>, #tpu.dimension_semantics<parallel>], iteration_bounds = array<i64: 2, 1>, scalar_prefetch = 0 : i64, scratch_operands = 0 : i64, tpu.core_type = #tpu.core_type<tc>, window_params = [{transform_indices = @transform_0, window_bounds = array<i64: 1, 8, 32>}, {pipeline_mode = #tpu.pipeline_mode<synchronous>, transform_indices = @transform_1, window_bounds = array<i64: 32, 96>}, {pipeline_mode = #tpu.pipeline_mode<synchronous>, transform_indices = @transform_2, window_bounds = array<i64: 1, 96>}, {transform_indices = @transform_3, window_bounds = array<i64: 1, 8, 32>}, {transform_indices = @transform_4, window_bounds = array<i64: 1, 8, 32>}, {transform_indices = @transform_5, window_bounds = array<i64: 1, 8, 32>}]} {
    %c0 = arith.constant 0 : index
    %c0_0 = arith.constant 0 : index
    %c0_1 = arith.constant 0 : index
    %0 = vector.load %arg2[%c0, %c0_0, %c0_1] : memref<1x8x32xf32, #tpu.memory_space<vmem>>, vector<1x8x32xf32>
    %1 = vector.shape_cast %0 : vector<1x8x32xf32> to vector<8x32xf32>
    %2 = arith.truncf %1 : vector<8x32xf32> to vector<8x32xbf16>
    %c0_2 = arith.constant 0 : index
    %c0_3 = arith.constant 0 : index
    %3 = vector.load %arg3[%c0_2, %c0_3] : memref<32x96xbf16, #tpu.memory_space<vmem>>, vector<32x96xbf16>
    %cst = arith.constant dense<0.000000e+00> : vector<8x96xf32>
    %4 = tpu.matmul %2, %3, %cst {dimension_numbers = #tpu.dot_dimension_numbers<[1], [0], [0], [1], [0, 0, 1, 1], [], []>} : vector<8x32xbf16>, vector<32x96xbf16>, vector<8x96xf32> -> vector<8x96xf32>
    %c0_4 = arith.constant 0 : index
    %c0_5 = arith.constant 0 : index
    %5 = vector.load %arg4[%c0_4, %c0_5] : memref<1x96xf32, #tpu.memory_space<vmem>>, vector<1x96xf32>
    %6 = vector.broadcast %5 : vector<1x96xf32> to vector<8x96xf32>
    %7 = arith.addf %4, %6 : vector<8x96xf32>
    %8 = vector.extract_strided_slice %7 {offsets = [0, 0], sizes = [8, 32], strides = [1, 1]} : vector<8x96xf32> to vector<8x32xf32>
    %9 = arith.truncf %8 : vector<8x32xf32> to vector<8x32xbf16>
    %c0_6 = arith.constant 0 : index
    %c0_7 = arith.constant 0 : index
    %c0_8 = arith.constant 0 : index
    %10 = vector.load %arg5[%c0_6, %c0_7, %c0_8] : memref<1x8x32xbf16, #tpu.memory_space<vmem>>, vector<1x8x32xbf16>
    %11 = vector.shape_cast %10 : vector<1x8x32xbf16> to vector<8x32xbf16>
    %12 = vector.shape_cast %9 : vector<8x32xbf16> to vector<1x8x32xbf16>
    tpu.vector_store %arg5[%c0_6, %c0_7, %c0_8], %12 {strides = array<i32>} : memref<1x8x32xbf16, #tpu.memory_space<vmem>>, vector<1x8x32xbf16>,
    %13 = vector.extract_strided_slice %7 {offsets = [0, 32], sizes = [8, 32], strides = [1, 1]} : vector<8x96xf32> to vector<8x32xf32>
    %14 = arith.truncf %13 : vector<8x32xf32> to vector<8x32xbf16>
    %c0_9 = arith.constant 0 : index
    %c0_10 = arith.constant 0 : index
    %c0_11 = arith.constant 0 : index
    %15 = vector.load %arg6[%c0_9, %c0_10, %c0_11] : memref<1x8x32xbf16, #tpu.memory_space<vmem>>, vector<1x8x32xbf16>
    %16 = vector.shape_cast %15 : vector<1x8x32xbf16> to vector<8x32xbf16>
    %17 = vector.shape_cast %14 : vector<8x32xbf16> to vector<1x8x32xbf16>
    tpu.vector_store %arg6[%c0_9, %c0_10, %c0_11], %17 {strides = array<i32>} : memref<1x8x32xbf16, #tpu.memory_space<vmem>>, vector<1x8x32xbf16>,
    %18 = vector.extract_strided_slice %7 {offsets = [0, 64], sizes = [8, 32], strides = [1, 1]} : vector<8x96xf32> to vector<8x32xf32>
    %19 = arith.truncf %18 : vector<8x32xf32> to vector<8x32xbf16>
    %c0_12 = arith.constant 0 : index
    %c0_13 = arith.constant 0 : index
    %c0_14 = arith.constant 0 : index
    %20 = vector.load %arg7[%c0_12, %c0_13, %c0_14] : memref<1x8x32xbf16, #tpu.memory_space<vmem>>, vector<1x8x32xbf16>
    %21 = vector.shape_cast %20 : vector<1x8x32xbf16> to vector<8x32xbf16>
    %22 = vector.shape_cast %19 : vector<8x32xbf16> to vector<1x8x32xbf16>
    tpu.vector_store %arg7[%c0_12, %c0_13, %c0_14], %22 {strides = array<i32>} : memref<1x8x32xbf16, #tpu.memory_space<vmem>>, vector<1x8x32xbf16>,
    return
  }
  func.func @transform_0(%arg0: i32, %arg1: i32) -> (i32, i32, i32) {
    %c0_i32 = arith.constant 0 : i32
    %c0_i32_0 = arith.constant 0 : i32
    return %arg0, %arg1, %c0_i32 : i32, i32, i32
  }
  func.func @transform_1(%arg0: i32, %arg1: i32) -> (i32, i32) {
    %c0_i32 = arith.constant 0 : i32
    %c0_i32_0 = arith.constant 0 : i32
    %c0_i32_1 = arith.constant 0 : i32
    return %c0_i32, %c0_i32_0 : i32, i32
  }
  func.func @transform_2(%arg0: i32, %arg1: i32) -> (i32, i32) {
    %c0_i32 = arith.constant 0 : i32
    %c0_i32_0 = arith.constant 0 : i32
    %c0_i32_1 = arith.constant 0 : i32
    return %c0_i32, %c0_i32_0 : i32, i32
  }
  func.func @transform_3(%arg0: i32, %arg1: i32) -> (i32, i32, i32) {
    %c0_i32 = arith.constant 0 : i32
    %c0_i32_0 = arith.constant 0 : i32
    return %arg0, %arg1, %c0_i32 : i32, i32, i32
  }
  func.func @transform_4(%arg0: i32, %arg1: i32) -> (i32, i32, i32) {
    %c0_i32 = arith.constant 0 : i32
    %c0_i32_0 = arith.constant 0 : i32
    return %arg0, %arg1, %c0_i32 : i32, i32, i32
  }
  func.func @transform_5(%arg0: i32, %arg1: i32) -> (i32, i32, i32) {
    %c0_i32 = arith.constant 0 : i32
    %c0_i32_0 = arith.constant 0 : i32
    return %arg0, %arg1, %c0_i32 : i32, i32, i32
  }
}

</mosaic_0001>

<bundles_post_ra>
// kernel: tpu_custom_call.1
= control target key start
LH: loop header
LB: loop body
LE: loop exit
PB: predicated region body
PF: predicated region fallthrough
CT: control target
= control target key end

     0   :  { %s1120_s0 = inlined_call_operand.hbm [shape: f32[2,8,32], index: 0, kind: input, shape index: {}]   ;;  %s1121_s1 = inlined_call_operand.hbm [shape: bf16[32,96], index: 1, kind: input, shape index: {}]   ;;  %s1122_s2 = inlined_call_operand.vmem [shape: f32[1,96], index: 2, kind: input, shape index: {}]   ;;  %s1123_s3 = inlined_call_operand.hbm [shape: bf16[2,8,32], index: 3, kind: output, shape index: {0}]   ;;  %s1124_s4 = inlined_call_operand.hbm [shape: bf16[2,8,32], index: 4, kind: output, shape index: {1}]   ;;  %s1125_s5 = inlined_call_operand.hbm [shape: bf16[2,8,32], index: 5, kind: output, shape index: {2}]  }
   0x1   :  { %1127 = sst [smem:[#allocation15_spill]] %s1120_s0 }
   0x2   :  { %11 = vsyncpa [#allocation3], 0 }
   0x3   :  { %13 = vsyncpa [#allocation3 + $0x1], 0 }
   0x4   :  { %14 = vsyncpa [#allocation6], 0 }
   0x5   :  { %15 = vsyncpa [#allocation4], 0 }
   0x6   :  { %17 = vsyncpa [#allocation4 + $0x1], 0 }
   0x7   :  { %18 = vsyncpa [#allocation9], 0 }
   0x8   :  { %20 = vsyncpa [#allocation9 + $0x1], 0  ;;  %s925_s18 = smov 0   ;;  %s927_s19 = smov 0  }
   0x9   :  { %s929_s20 = smov 0   ;;  %s931_s21 = smov 0  }
   0xa   :  { %s933_s22 = smov 0   ;;  %s935_s23 = smov 0  }
   0xb LB: > { %s956_s24 = sadd.s32 4294967295, %s888_s23   ;;  %p564_p0 = scmp.ge.s32.totalorder %s888_s23, 1  ;;  %s888_s23 = sphi %s935_s23, %s26_s23   ;;  %s884_s22 = sphi %s933_s22, %s1139_s22   ;;  %s880_s21 = sphi %s931_s21, %s1138_s21   ;;  %s876_s20 = sphi %s929_s20, %s1137_s20   ;;  %s872_s19 = sphi %s927_s19, %s1136_s19   ;;  %s868_s18 = sphi %s925_s18, %s1135_s18  }
   0xc   : > { %p61_p1 = scmp.eq.s32.totalorder %s956_s24, 0  ;;  %p197_p2 = scmp.lt.s32.totalorder %s888_s23, 3 }
   0xd   : > { %s208_s27 = sshll.u32 %s1121_s1, 4  ;;  %s890_s29 = smov [#allocation5]   ;;  %s209_s27 = int_to_ptr.hbm [resolvable:$true] %s208_s27 }
   0xe   : > { %p964_p3 = pnand %p564_p0, %p197_p2  ;;  %s210_s30 = sshll.u32 %s890_s29, 4  ;;  %s211_s30 = int_to_ptr.vmem [resolvable:$true] %s210_s30 }
   0xf   : > { %p566_p6 = scmp.ge.s32.totalorder %s888_s23, 2  ;;  %s891_s6 = smov 64  }
  0x10   : > { %p606_p4 = pneg %p964_p3  ;;  %s892_s7 = smov 4  }
  0x11   : > { %s1126_s8 = sadd.s32 4294967294, %s888_s23   ;;  %s38_s9 = sadd.s32 1, %s884_s22 }
  0x12   : > { %p607_p5 = pnand %p606_p4, %p61_p1  ;;  %s47_s10 = sadd.s32 1, %s876_s20 }
  0x13   : > { %p40_p7 = scmp.ge.s32.totalorder %s38_s9, 2  ;;  %p54_p8 = scmp.ne.s32.totalorder %s876_s20, %s872_s19 }
  0x14   : > { %609 = dma.hbm_to_vmem [thread:$0]  (!%p607_p5), %s209_s27, 256, %s211_s30, [#allocation6], %s891_s6, %s891_s6, %s892_s7  }
  0x15   : > { %p55_p9 = scmp.eq.s32.totalorder %s888_s23, 0  ;;  %p60_p10 = scmp.ne.s32.totalorder %s872_s19, %s868_s18 }
  0x16   : > { %s1141_s9 = smov (%p40_p7, %s38_s9), 0  ;;  %p128_p13 = scmp.eq.s32.totalorder %s956_s24, 1 }
  0x17   : > { %p983_p11 = por %p55_p9, %p54_p8  ;;  %p989_p12 = por %p61_p1, %p60_p10 }
  0x18   : > { %s42_s13 = ssub.s32 %s884_s22, %s1141_s9  ;;  %p134_p2 = scmp.eq.s32.totalorder %s1126_s8, 1 }
  0x19   : > { %p45_p0 = scmp.eq.s32.totalorder %s42_s13, 0  ;;  %p998_p4 = por %p128_p13, %p54_p8 }
  0x1a   : > { %p625_p5 = scmp.lt.s32.totalorder %s888_s23, 2  ;;  %p1006_p7 = por %p134_p2, %p60_p10 }
  0x1b   : > { %s1004_s15 = scalar_select %p45_p0, %s876_s20, %s47_s10  }
  0x1c   : > { %s227_s17 = sand.u32 1, %s876_s20   ;;  %s568_s26 = sshll.u32 %s884_s22, 3 }
  0x1d   : > { %s567_s25 = sshll.u32 %s227_s17, 3  ;;  %s1133_s0 = sld [smem:[#allocation15_spill]] }
  0x1e   : > { %s231_s6 = scalar_lea.vmem [#allocation2], %s567_s25  ;;  %p611_p8 = pnand %p625_p5, %p983_p11 }
  0x1f   : > { %s240_s7 = sshll.u32 %s231_s6, 4  ;;  %s228_s10 = scalar_lea.sflag [#allocation3], %s227_s17  ;;  %s241_s7 = int_to_ptr.vmem [resolvable:$true] %s240_s7 }
  0x20   : > { %s1020_s8 = sand.u32 (!%p964_p3), 1, %s872_s19  }
  0x21   : > { %249 = sbr.rel (%p964_p3) target bundleno = 310 (0x136), region = 32  ;;  %s570_s27 = sshll.u32 (!%p964_p3), %s1020_s8, 3 }
  0x22   : > { %s255_s25 = scalar_lea.vmem (!%p964_p3), [#allocation2], %s570_s27 }
  0x23   : > { %s236_s30 = scalar_lea.hbm %s1133_s0, %s568_s26  ;;  %s252_s26 = scalar_lea.sflag (!%p964_p3), [#allocation3], %s1020_s8 }
  0x24   : > { %s238_s13 = sshll.u32 %s236_s30, 4  ;;  %s239_s13 = int_to_ptr.hbm [resolvable:$true] %s238_s13 }
  0x25   : > { %613 = dma.hbm_to_vmem [thread:$0]  (!%p611_p8), %s239_s13, 128, %s241_s7, %s228_s10  }
  0x26   : > { %851 = dma.done.wait (%p989_p12), %s252_s26, 128  }
  0x27   : > { %853 = vsyncadd (%p989_p12), %s252_s26, 4294967168 }
  0x28   : > { %855 = dma.done.wait (%p61_p1), [#allocation6], 256  }
  0x29   : > { %857 = vsyncadd (%p61_p1), [#allocation6], 4294967040  ;;  %v593_v0 = vld [vmem:[#allocation5 + $0x8] sm:$0xff]  ;;  %v592_v1 = vld [vmem:[#allocation5] sm:$0xff]  ;;  %vm321_vm0 = vcmask 261120   ;;  %s1036_s12 = sshll.u32 %s1020_s8, 2 }
  0x2a   : > { %331 = vmatpush.bf16.msra.mxu0 %v593_v0  ;;  %v299_v2 = vld [vmem:[%s255_s25] sm:$0xff]  ;;  %s1039_s17 = sshll.u32 %s880_s21, 2  ;;  %vm339_vm1 = vcmask 257024   ;;  %s283_s7 = scalar_lea.vmem [#allocation7], %s1036_s12 }
  0x2b   : > { %v300_v3 = vpack.c.bf16 %v299_v2, %v299_v2  ;;  %v681_v4 = vld [vmem:[%s1122_s2] ss:$0 sm:$0xff]  ;;  %s372_s6 = scalar_lea.hbm %s1123_s3, %s1039_s17  ;;  %s374_s13 = sshll.u32 %s283_s7, 4  ;;  %s375_s13 = int_to_ptr.vmem [resolvable:$true] %s374_s13 }
  0x2c   : > { %s376_s10 = sshll.u32 %s372_s6, 4  ;;  %s893_s27 = smov 96   ;;  %s377_s10 = int_to_ptr.hbm [resolvable:$true] %s376_s10 }
  0x2d   : > { %s351_s21 = scalar_lea.sflag [#allocation4], %s1020_s8  ;;  %s756_s26 = sshra.s32 %s377_s10, 4  ;;  %s757_s26 = int_to_ptr.hbm [resolvable:$true] %s756_s26 }
  0x2e   : > { %332 = vmatpush.bf16.msra.mxu0 %v592_v1  ;;  %s758_s25 = scalar_lea.hbm %s757_s26, 4  ;;  %s762_s29 = scalar_lea.hbm %s1123_s3, 8 }
  0x2f   : > { %p759_p1 = scmp.ne.s32.totalorder %s757_s26, %s758_s25  ;;  %p763_p10 = scmp.lt.s32.totalorder %s757_s26, %s1123_s3 }
  0x30   : > { %p764_p11 = scmp.lt.s32.totalorder %s762_s29, %s758_s25 }
  0x31   : > { %583 = vmatmul.msk.bf16.vlgmr.msra.gmra.mxu0 %vm321_vm0, %v300_v3  ;;  %p760_p3 = pnand %p759_p1, %p998_p4 }
  0x32   : > { %p765_p12 = por %p764_p11, %p763_p10 }
  0x33   : > { %p761_p9 = pneg %p760_p3 }
  0x35   : > { %p766_p13 = pnand %p765_p12, %p761_p9 }
  0xae   : > { %v334_v5 = vpop.f32.mrf.mxu0 }
  0xaf   : > { %v335_v6 = vadd.f32 %v681_v4, %v334_v5 }
  0xb1   : > { %v338_v7 = vpack.c.bf16 %v335_v6, %v335_v6 }
  0xb3   : > { %342 = vrot.lane.b32.xlu0 %v338_v7, %s893_s27  ;;  %340 = vst.msk [vmem:[%s283_s7] sm:$0xf] %vm339_vm1, %v338_v7 }
  0xb4   : > { %769 = shalt.err (!%p766_p13)
}
  0xb5   : > { %600 = dma.vmem_to_hbm [thread:$0]  (%p998_p4), %s375_s13, 64, %s377_s10, %s351_s21  }
  0xb6   : > { %v336_v8 = vpop.f32.mrf.mxu0  ;;  %s894_s8 = smov 64   ;;  %s387_s28 = scalar_lea.hbm %s1124_s4, %s1039_s17 }
  0xb7   : > { %s355_s26 = sand.u32 1, %s956_s24   ;;  %s290_s25 = scalar_lea.vmem [#allocation8], %s1036_s12 }
  0xb8   : > { %s389_s11 = sshll.u32 %s290_s25, 4  ;;  %s391_s29 = sshll.u32 %s387_s28, 4  ;;  %s390_s11 = int_to_ptr.vmem [resolvable:$true] %s389_s11  ;;  %s392_s29 = int_to_ptr.hbm [resolvable:$true] %s391_s29 }
  0xb9   : > { %s402_s13 = scalar_lea.hbm %s1125_s5, %s1039_s17  ;;  %s1069_s10 = scalar_lea.sflag [#allocation9], %s355_s26 }
  0xba   : > { %s784_s21 = sshra.s32 %s392_s29, 4  ;;  %s790_s27 = scalar_lea.hbm %s1124_s4, 8  ;;  %s785_s21 = int_to_ptr.hbm [resolvable:$true] %s784_s21 }
  0xbb   : > { %346 = vrot.lane.b32.xlu0 %v338_v7, %s894_s8  ;;  %s786_s8 = scalar_lea.hbm %s785_s21, 4  ;;  %p791_p8 = scmp.lt.s32.totalorder %s785_s21, %s1124_s4 }
  0xbc   : > { %p787_p0 = scmp.ne.s32.totalorder %s785_s21, %s786_s8  ;;  %p792_p1 = scmp.lt.s32.totalorder %s790_s27, %s786_s8 }
  0xbe   : > { %p788_p2 = pnand %p787_p0, %p998_p4  ;;  %p793_p3 = por %p792_p1, %p791_p8 }
  0xc0   : > { %p789_p5 = pneg %p788_p2 }
  0xc2   : > { %p794_p9 = pnand %p793_p3, %p789_p5 }
 0x125   : > { %v343_v9 = vpop.permute.xlu0 %342 }
 0x126   : > { %345 = vst.msk [vmem:[%s290_s25] sm:$0xf] %vm339_vm1, %v343_v9 }
 0x127   : > { %797 = shalt.err (!%p794_p9)
}
 0x128   : > { %601 = dma.vmem_to_hbm [thread:$0]  (%p998_p4), %s390_s11, 64, %s392_s29, %s1069_s10  }
 0x129   : > { %s297_s17 = scalar_lea.vmem [#allocation10], %s1036_s12  ;;  %s406_s25 = sshll.u32 %s402_s13, 4  ;;  %s407_s25 = int_to_ptr.hbm [resolvable:$true] %s406_s25 }
 0x12a   : > { %s404_s26 = sshll.u32 %s297_s17, 4  ;;  %s812_s0 = sshra.s32 %s407_s25, 4  ;;  %s405_s26 = int_to_ptr.vmem [resolvable:$true] %s404_s26  ;;  %s813_s0 = int_to_ptr.hbm [resolvable:$true] %s812_s0 }
 0x12b   : > { %s814_s30 = scalar_lea.hbm %s813_s0, 4  ;;  %s818_s8 = scalar_lea.hbm %s1125_s5, 8 }
 0x12c   : > { %p815_p10 = scmp.ne.s32.totalorder %s813_s0, %s814_s30  ;;  %p819_p13 = scmp.lt.s32.totalorder %s813_s0, %s1125_s5 }
 0x12d   : > { %v347_v10 = vpop.permute.xlu0 %346  ;;  %p820_p0 = scmp.lt.s32.totalorder %s818_s8, %s814_s30 }
 0x12e   : > { %349 = vst.msk [vmem:[%s297_s17] sm:$0xf] %vm339_vm1, %v347_v10  ;;  %p816_p11 = pnand %p815_p10, %p998_p4 }
 0x12f   : > { %p821_p2 = por %p820_p0, %p819_p13 }
 0x130   : > { %p817_p12 = pneg %p816_p11 }
 0x132   : > { %p822_p5 = pnand %p821_p2, %p817_p12 }
 0x134   : > { %825 = shalt.err (!%p822_p5)
}
 0x135   : > { %602 = dma.vmem_to_hbm [thread:$0]  (%p998_p4), %s405_s26, 64, %s407_s25, %s1069_s10  }
 0x136 PF: > { %s418_s29 = sand.u32 1, %s868_s18   ;;  %p615_p8 = pnand %p566_p6, %p1006_p7 }
 0x137   : > { %s419_s13 = scalar_lea.sflag [#allocation4], %s418_s29 }
 0x138   : > { %p616_p1 = pneg %p615_p8 }
 0x13a   : > { %859 = dma.done.wait (%p616_p1), %s419_s13, 64  }
 0x13b   : > { %861 = vsyncadd (%p616_p1), %s419_s13, 4294967232  ;;  %s1134_s24 = sadd.s32 4294967294, %s888_s23  }
 0x13c   : > { %s428_s7 = sand.u32 1, %s1134_s24  }
 0x13d   : > { %s429_s27 = scalar_lea.sflag [#allocation9], %s428_s7 }
 0x13e   : > { %863 = dma.done.wait (%p616_p1), %s429_s27, 128  }
 0x13f   : > { %865 = vsyncadd (%p616_p1), %s429_s27, 4294967168  ;;  %s26_s23 = sadd.s32 1, %s888_s23   ;;  %s1135_s18 = smov %s872_s19 }
 0x140   : > { %p23_p4 = scmp.ge.s32.totalorder %s26_s23, 4   ;;  %s1136_s19 = smov %s876_s20 }
 0x141   : > { %s1137_s20 = smov %s1004_s15  ;;  %s1138_s21 = smov %s884_s22 }
 0x142   : > { %s1139_s22 = smov %s1141_s9  ;;  %25 = sbr.rel (!%p23_p4) target bundleno = 11 (0xb), region = 113 }
 0x147   :  { %445 = vsyncpa [#allocation3], 1 }
 0x148   :  { %447 = vsyncpa [#allocation3 + $0x1], 1 }
 0x149   :  { %448 = vsyncpa [#allocation6], 1 }
 0x14a   :  { %449 = vsyncpa [#allocation4], 1 }
 0x14b   :  { %451 = vsyncpa [#allocation4 + $0x1], 1 }
 0x14c   :  { %452 = vsyncpa [#allocation9], 1 }
 0x14d   :  { %454 = vsyncpa [#allocation9 + $0x1], 1 }

</bundles_post_ra>
